<compile_context>
chip_gen: v6e
topology: v6e:2x2x1
jax: 0.10.0
libtpu: 0.0.40
codegen_flags: <defaults>
</compile_context>

<pallas_src>
import functools

import jax
import jax.numpy as jnp
from jax.experimental import pallas as pl
from jax.experimental.pallas import tpu as pltpu

_LANE = 128
_SUBLANE = 8
_MiB = 1 << 20


def _round_up(n, m):
    return ((n + m - 1) // m) * m


def _apply_activation(y, activation, dout_true):
    dout_pad = y.shape[-1]
    if activation == "relu":
        return jnp.maximum(y, 0.0)
    if activation == "tanh":
        return jnp.tanh(y)
    if activation == "sigmoid":
        return jax.nn.sigmoid(y)
    if activation == "softmax":
        if dout_true != dout_pad:
            # Mask zero-padded lanes to -inf so they don't pollute the sum.
            # (Skipped entirely at trace time when there is no lane padding.)
            col = jax.lax.broadcasted_iota(jnp.int32, y.shape, y.ndim - 1)
            y = jnp.where(col < dout_true, y, -jnp.inf)
        y = y - jnp.max(y, axis=-1, keepdims=True)
        e = jnp.exp(y)
        return e / jnp.sum(e, axis=-1, keepdims=True)
    if activation == "lrelu":
        return jnp.where(y >= 0.0, y, 0.01 * y)
    if activation == "pass":
        return y
    raise ValueError(f"unknown activation {activation}")


def _stack_kernel(*refs, activation, meta):
    """Fused forward of the whole layer stack for one batch tile.

    refs = (x_ref, w0_ref, p0_ref, w1_ref, p1_ref, ..., o_ref)
    w*   : (Din_pad, Dout_pad) bf16, BN / next-layer-affine folded, zero K-pad.
    p*   : f32 (1, Dout_pad) = [bias]  or  (3, Dout_pad) = [bias, scale, shift]
           (3 rows only on the final layer when normorder=='last').
    """
    x_ref, o_ref = refs[0], refs[-1]
    layer_refs = refs[1:-1]

    y = x_ref[...]                                    # f32 (tb, Din_pad0)
    for li, (_din_pad, _dout_pad, dout_true, has_affine) in enumerate(meta):
        w = layer_refs[2 * li][...]                   # bf16
        p = layer_refs[2 * li + 1][...]               # f32
        # bf16 x bf16 -> f32 accumulation on the MXU.
        y = jnp.dot(y.astype(w.dtype), w, preferred_element_type=jnp.float32)
        y = y + p[0:1, :]                             # bias (BN/affine folded in)
        y = _apply_activation(y, activation, dout_true)
        if has_affine:                                # last layer, normorder=='last'
            y = y * p[1:2, :] + p[2:3, :]
        # Dropout is identity in eval mode.
        # NOTE: padded feature lanes may be non-zero after sigmoid/softmax;
        # correctness relies on every weight's padded K rows being zero
        # (maintained by the padding in __init__).
    o_ref[...] = y.astype(o_ref.dtype)


def _param_spec(shape, single_buffer):
    if single_buffer:
        # Constant index_map -> a second pipeline buffer is pure VMEM waste.
        return pl.BlockSpec(shape, lambda i: (0, 0), pipeline_mode=pl.Buffered(1))
    return pl.BlockSpec(shape, lambda i: (0, 0))


@functools.partial(jax.jit,
                   static_argnames=("activation", "meta", "tb", "single_buffer"))
def _forward(x, flat_params, *, activation, meta, tb, single_buffer):
    """Pad (only if needed), run the single fused pallas_call, slice back."""
    B, Din = x.shape
    din_pad0 = meta[0][0]
    dout_pad_last = meta[-1][1]
    dout_true_last = meta[-1][2]

    b_pad = _round_up(B, tb)
    x = x.astype(jnp.float32)
    if b_pad != B or din_pad0 != Din:
        x = jnp.pad(x, ((0, b_pad - B), (0, din_pad0 - Din)))

    in_specs = [pl.BlockSpec((tb, din_pad0), lambda i: (i, 0))]
    for (din_pad, dout_pad, _dout, has_affine) in meta:
        in_specs.append(_param_spec((din_pad, dout_pad), single_buffer))
        in_specs.append(_param_spec((3 if has_affine else 1, dout_pad),
                                    single_buffer))

    kernel = functools.partial(_stack_kernel, activation=activation, meta=meta)

    # --- VMEM budget: resident params (x buffer count) + pipelined x/out tiles
    #     + headroom for the live f32 activation temporaries. ---------------
    wp_bytes = sum(int(p.size) * p.dtype.itemsize for p in flat_params)
    bufs = 1 if single_buffer else 2
    max_w = max([din_pad0] + [m[1] for m in meta])
    needed = (bufs * wp_bytes
              + 2 * tb * (din_pad0 + dout_pad_last) * 4
              + 6 * tb * max_w * 4
              + 2 * _MiB)
    vmem_limit = int(min(max(needed, 32 * _MiB), 112 * _MiB))

    flops = 2 * b_pad * sum(m[0] * m[1] for m in meta)
    transc = (b_pad * sum(m[1] for m in meta)
              if activation in ("tanh", "sigmoid", "softmax") else 0)
    bytes_accessed = (b_pad * din_pad0 * 4 + wp_bytes + b_pad * dout_pad_last * 4)

    out_pad = pl.pallas_call(
        kernel,
        out_shape=jax.ShapeDtypeStruct((b_pad, dout_pad_last), jnp.float32),
        grid=(b_pad // tb,),
        in_specs=in_specs,
        out_specs=pl.BlockSpec((tb, dout_pad_last), lambda i: (i, 0)),
        compiler_params=pltpu.CompilerParams(
            dimension_semantics=("parallel",),      # megacore over batch tiles
            vmem_limit_bytes=vmem_limit),
        cost_estimate=pl.CostEstimate(flops=flops, transcendentals=transc,
                                      bytes_accessed=bytes_accessed),
    )(x, *flat_params)

    return out_pad[:B, :dout_true_last]


class SubNetworkPallas:
    """JAX/Pallas port of SubNetwork (eval-mode forward), fully fused."""

    def __init__(self, input_size, hidden_sizes, dropout_rates, activation,
                 normorder, normtype, key):
        self.activation = activation
        self.normorder = normorder
        self.passflag = len(hidden_sizes) == 0
        self._single_buffer = None        # resolved lazily on first call
        self.ref_params = []
        flat, meta = [], []
        if self.passflag:
            self.flat_params, self.meta = (), ()
            return

        sizes = [input_size] + list(hidden_sizes)
        nl = len(hidden_sizes)
        eps = 1e-5
        pending_scale = None              # normorder=='last': affine to fold forward
        pending_shift = None
        for li in range(nl):
            din, dout = sizes[li], sizes[li + 1]
            key, kw, kb, kg, kbe, km, kv = jax.random.split(key, 7)
            # nn.Linear default init: U(-1/sqrt(din), 1/sqrt(din))
            bound = 1.0 / float(din) ** 0.5
            w = jax.random.uniform(kw, (dout, din), jnp.float32, -bound, bound)
            b = jax.random.uniform(kb, (dout,), jnp.float32, -bound, bound)
            if normtype == "batch1d":
                gamma = jax.random.uniform(kg, (dout,), jnp.float32, 0.5, 1.5)
                beta = jax.random.uniform(kbe, (dout,), jnp.float32, -0.5, 0.5)
                rmean = jax.random.uniform(km, (dout,), jnp.float32, -0.5, 0.5)
                rvar = jax.random.uniform(kv, (dout,), jnp.float32, 0.5, 1.5)
                scale = gamma / jnp.sqrt(rvar + eps)
                shift = beta - rmean * scale
            else:  # 'pass' -> identity norm
                scale = jnp.ones((dout,), jnp.float32)
                shift = jnp.zeros((dout,), jnp.float32)

            w_t = jnp.asarray(w.T)                          # (din, dout)
            self.ref_params.append(dict(w_t=w_t, b=b, scale=scale, shift=shift))

            # Fold the PREVIOUS layer's post-activation affine (normorder=='last')
            # into this layer's weights/bias. Exact; zero runtime cost.
            w_eff, b_eff = w_t, b
            if pending_scale is not None:
                w_eff = pending_scale[:, None] * w_eff
                b_eff = b_eff + pending_shift @ w_t
                pending_scale = pending_shift = None

            has_affine = False
            if normorder == "first":
                # BN runs before the activation -> fold into W / bias.
                w_eff = w_eff * scale[None, :]
                b_eff = b_eff * scale + shift
            else:  # 'last': BN runs after the activation
                if li < nl - 1:
                    pending_scale, pending_shift = scale, shift
                else:
                    has_affine = True       # explicit affine only on last layer

            # Layer 0: K only needs 8-alignment; inner layers are 128-wide by
            # construction (previous layer's lane-padded output).
            din_pad = _round_up(din, _SUBLANE) if li == 0 else _round_up(din, _LANE)
            dout_pad = _round_up(dout, _LANE)
            # Padded K rows MUST stay zero (sigmoid/softmax leave non-zero values
            # in padded lanes of the previous activation).
            w_pad = jnp.zeros((din_pad, dout_pad), jnp.float32)
            w_pad = w_pad.at[:din, :dout].set(w_eff).astype(jnp.bfloat16)
            rows = 3 if has_affine else 1
            p_pad = jnp.zeros((rows, dout_pad), jnp.float32)
            p_pad = p_pad.at[0, :dout].set(b_eff)
            if has_affine:
                p_pad = p_pad.at[1, :dout].set(scale)
                p_pad = p_pad.at[2, :dout].set(shift)

            flat.extend([w_pad, p_pad])
            meta.append((din_pad, dout_pad, dout, has_affine))

        self.flat_params = tuple(flat)
        self.meta = tuple(meta)

    @staticmethod
    def _choose_tb(batch):
        b8 = _round_up(batch, _SUBLANE)
        tb = min(b8, 512)                 # large tiles amortize ~0.35us/grid-step
        if b8 >= 2 * _SUBLANE:
            # Guarantee >= 2 grid steps so v7x's second TensorCore gets work
            # via the 'parallel' batch axis.
            tb = min(tb, _round_up((b8 + 1) // 2, _SUBLANE))
        return tb

    def __call__(self, x):
        if self.passflag:
            return x
        tb = self._choose_tb(x.shape[0])
        if self._single_buffer is None:
            # Prefer single-buffered (pl.Buffered(1)) resident params; fall back
            # transparently if this JAX build rejects the pipeline_mode.
            try:
                out = _forward(x, self.flat_params, activation=self.activation,
                               meta=self.meta, tb=tb, single_buffer=True)
                jax.block_until_ready(out)
                self._single_buffer = True
                return out
            except Exception:
                self._single_buffer = False
        return _forward(x, self.flat_params, activation=self.activation,
                        meta=self.meta, tb=tb, single_buffer=self._single_buffer)

    def reference(self, x):
        """Pure-JAX f32 reference (unfolded, unpadded) for correctness checks."""
        if self.passflag:
            return x
        for p in self.ref_params:
            y = x @ p["w_t"] + p["b"]
            if self.normorder == "first":
                y = y * p["scale"] + p["shift"]
                y = _apply_activation(y, self.activation, y.shape[-1])
            else:
                y = _apply_activation(y, self.activation, y.shape[-1])
                y = y * p["scale"] + p["shift"]
            x = y
        return x


if __name__ == "__main__":
    key = jax.random.PRNGKey(0)
    key, kx, kp1, kp2, kp3 = jax.random.split(key, 5)

    batch = 8
    input_size = 32
    hidden_sizes = [64, 32]
    dropout_rates = [0.1, 0.2]            # identity in eval mode

    x = jax.random.normal(kx, (batch, input_size), jnp.float32)

    # Exercise both normorder paths plus the softmax padding-mask path.
    configs = [("first", "relu", kp1), ("last", "tanh", kp2),
               ("last", "softmax", kp3)]
    for normorder, activation, kp in configs:
        net = SubNetworkPallas(input_size, hidden_sizes, dropout_rates,
                               activation, normorder, "batch1d", kp)
        out = jax.block_until_ready(net(x))
        ref = net.reference(x)
        assert out.shape == (batch, hidden_sizes[-1])
        # bf16 weights/activations on the MXU -> compare against the exact f32
        # reference with bf16-appropriate tolerance.
        assert jnp.allclose(out, ref, atol=5e-2, rtol=5e-2), (
            f"mismatch vs reference ({normorder}/{activation}): "
            f"max abs diff {float(jnp.max(jnp.abs(out - ref)))}")

    print("KERNEL_OK")
</pallas_src>

<mosaic_0001>
module attributes {stable_mosaic.version = 11 : i64} {
  func.func @_stack_kernel(%arg0: i32, %arg1: memref<8x32xf32, #tpu.memory_space<vmem>>, %arg2: memref<32x128xbf16, #tpu.memory_space<vmem>>, %arg3: memref<1x128xf32, #tpu.memory_space<vmem>>, %arg4: memref<128x128xbf16, #tpu.memory_space<vmem>>, %arg5: memref<1x128xf32, #tpu.memory_space<vmem>>, %arg6: memref<8x128xf32, #tpu.memory_space<vmem>>) attributes {dimension_semantics = [#tpu.dimension_semantics<parallel>], iteration_bounds = array<i64: 1>, scalar_prefetch = 0 : i64, scratch_operands = 0 : i64, tpu.core_type = #tpu.core_type<tc>, window_params = [{transform_indices = @transform_0, window_bounds = array<i64: 8, 32>}, {pipeline_mode = #tpu.pipeline_mode<synchronous>, transform_indices = @transform_1, window_bounds = array<i64: 32, 128>}, {pipeline_mode = #tpu.pipeline_mode<synchronous>, transform_indices = @transform_2, window_bounds = array<i64: 1, 128>}, {pipeline_mode = #tpu.pipeline_mode<synchronous>, transform_indices = @transform_3, window_bounds = array<i64: 128, 128>}, {pipeline_mode = #tpu.pipeline_mode<synchronous>, transform_indices = @transform_4, window_bounds = array<i64: 1, 128>}, {transform_indices = @transform_5, window_bounds = array<i64: 8, 128>}]} {
    %c0 = arith.constant 0 : index
    %c0_0 = arith.constant 0 : index
    %0 = vector.load %arg1[%c0, %c0_0] : memref<8x32xf32, #tpu.memory_space<vmem>>, vector<8x32xf32>
    %c0_1 = arith.constant 0 : index
    %c0_2 = arith.constant 0 : index
    %1 = vector.load %arg2[%c0_1, %c0_2] : memref<32x128xbf16, #tpu.memory_space<vmem>>, vector<32x128xbf16>
    %c0_3 = arith.constant 0 : index
    %c0_4 = arith.constant 0 : index
    %2 = vector.load %arg3[%c0_3, %c0_4] : memref<1x128xf32, #tpu.memory_space<vmem>>, vector<1x128xf32>
    %3 = arith.truncf %0 : vector<8x32xf32> to vector<8x32xbf16>
    %cst = arith.constant dense<0.000000e+00> : vector<8x128xf32>
    %4 = tpu.matmul %3, %1, %cst {dimension_numbers = #tpu.dot_dimension_numbers<[1], [0], [0], [1], [0, 0, 1, 1], [], []>} : vector<8x32xbf16>, vector<32x128xbf16>, vector<8x128xf32> -> vector<8x128xf32>
    %5 = vector.broadcast %2 : vector<1x128xf32> to vector<8x128xf32>
    %6 = arith.addf %4, %5 : vector<8x128xf32>
    %cst_5 = arith.constant 0.000000e+00 : f32
    %7 = vector.broadcast %cst_5 : f32 to vector<8x128xf32>
    %8 = arith.maximumf %6, %7 : vector<8x128xf32>
    %c0_6 = arith.constant 0 : index
    %c0_7 = arith.constant 0 : index
    %9 = vector.load %arg4[%c0_6, %c0_7] : memref<128x128xbf16, #tpu.memory_space<vmem>>, vector<128x128xbf16>
    %c0_8 = arith.constant 0 : index
    %c0_9 = arith.constant 0 : index
    %10 = vector.load %arg5[%c0_8, %c0_9] : memref<1x128xf32, #tpu.memory_space<vmem>>, vector<1x128xf32>
    %11 = arith.truncf %8 : vector<8x128xf32> to vector<8x128xbf16>
    %cst_10 = arith.constant dense<0.000000e+00> : vector<8x128xf32>
    %12 = tpu.matmul %11, %9, %cst_10 {dimension_numbers = #tpu.dot_dimension_numbers<[1], [0], [0], [1], [0, 0, 1, 1], [], []>} : vector<8x128xbf16>, vector<128x128xbf16>, vector<8x128xf32> -> vector<8x128xf32>
    %13 = vector.broadcast %10 : vector<1x128xf32> to vector<8x128xf32>
    %14 = arith.addf %12, %13 : vector<8x128xf32>
    %cst_11 = arith.constant 0.000000e+00 : f32
    %15 = vector.broadcast %cst_11 : f32 to vector<8x128xf32>
    %16 = arith.maximumf %14, %15 : vector<8x128xf32>
    %c0_12 = arith.constant 0 : index
    %c0_13 = arith.constant 0 : index
    %17 = vector.load %arg6[%c0_12, %c0_13] : memref<8x128xf32, #tpu.memory_space<vmem>>, vector<8x128xf32>
    tpu.vector_store %arg6[%c0_12, %c0_13], %16 {strides = array<i32>} : memref<8x128xf32, #tpu.memory_space<vmem>>, vector<8x128xf32>,
    return
  }
  func.func @transform_0(%arg0: i32) -> (i32, i32) {
    %c0_i32 = arith.constant 0 : i32
    %c0_i32_0 = arith.constant 0 : i32
    return %arg0, %c0_i32 : i32, i32
  }
  func.func @transform_1(%arg0: i32) -> (i32, i32) {
    %c0_i32 = arith.constant 0 : i32
    %c0_i32_0 = arith.constant 0 : i32
    %c0_i32_1 = arith.constant 0 : i32
    return %c0_i32, %c0_i32_0 : i32, i32
  }
  func.func @transform_2(%arg0: i32) -> (i32, i32) {
    %c0_i32 = arith.constant 0 : i32
    %c0_i32_0 = arith.constant 0 : i32
    %c0_i32_1 = arith.constant 0 : i32
    return %c0_i32, %c0_i32_0 : i32, i32
  }
  func.func @transform_3(%arg0: i32) -> (i32, i32) {
    %c0_i32 = arith.constant 0 : i32
    %c0_i32_0 = arith.constant 0 : i32
    %c0_i32_1 = arith.constant 0 : i32
    return %c0_i32, %c0_i32_0 : i32, i32
  }
  func.func @transform_4(%arg0: i32) -> (i32, i32) {
    %c0_i32 = arith.constant 0 : i32
    %c0_i32_0 = arith.constant 0 : i32
    %c0_i32_1 = arith.constant 0 : i32
    return %c0_i32, %c0_i32_0 : i32, i32
  }
  func.func @transform_5(%arg0: i32) -> (i32, i32) {
    %c0_i32 = arith.constant 0 : i32
    %c0_i32_0 = arith.constant 0 : i32
    return %arg0, %c0_i32 : i32, i32
  }
}

module attributes {stable_mosaic.version = 11 : i64} {
  func.func @_stack_kernel(%arg0: i32, %arg1: memref<8x32xf32, #tpu.memory_space<vmem>>, %arg2: memref<32x128xbf16, #tpu.memory_space<vmem>>, %arg3: memref<1x128xf32, #tpu.memory_space<vmem>>, %arg4: memref<128x128xbf16, #tpu.memory_space<vmem>>, %arg5: memref<1x128xf32, #tpu.memory_space<vmem>>, %arg6: memref<8x128xf32, #tpu.memory_space<vmem>>) attributes {dimension_semantics = [#tpu.dimension_semantics<parallel>], iteration_bounds = array<i64: 1>, scalar_prefetch = 0 : i64, scratch_operands = 0 : i64, tpu.core_type = #tpu.core_type<tc>, window_params = [{transform_indices = @transform_0, window_bounds = array<i64: 8, 32>}, {pipeline_mode = #tpu.pipeline_mode<synchronous>, transform_indices = @transform_1, window_bounds = array<i64: 32, 128>}, {pipeline_mode = #tpu.pipeline_mode<synchronous>, transform_indices = @transform_2, window_bounds = array<i64: 1, 128>}, {pipeline_mode = #tpu.pipeline_mode<synchronous>, transform_indices = @transform_3, window_bounds = array<i64: 128, 128>}, {pipeline_mode = #tpu.pipeline_mode<synchronous>, transform_indices = @transform_4, window_bounds = array<i64: 1, 128>}, {transform_indices = @transform_5, window_bounds = array<i64: 8, 128>}]} {
    %c0 = arith.constant 0 : index
    %c0_0 = arith.constant 0 : index
    %0 = vector.load %arg1[%c0, %c0_0] : memref<8x32xf32, #tpu.memory_space<vmem>>, vector<8x32xf32>
    %c0_1 = arith.constant 0 : index
    %c0_2 = arith.constant 0 : index
    %1 = vector.load %arg2[%c0_1, %c0_2] : memref<32x128xbf16, #tpu.memory_space<vmem>>, vector<32x128xbf16>
    %c0_3 = arith.constant 0 : index
    %c0_4 = arith.constant 0 : index
    %2 = vector.load %arg3[%c0_3, %c0_4] : memref<1x128xf32, #tpu.memory_space<vmem>>, vector<1x128xf32>
    %3 = arith.truncf %0 : vector<8x32xf32> to vector<8x32xbf16>
    %cst = arith.constant dense<0.000000e+00> : vector<8x128xf32>
    %4 = tpu.matmul %3, %1, %cst {dimension_numbers = #tpu.dot_dimension_numbers<[1], [0], [0], [1], [0, 0, 1, 1], [], []>} : vector<8x32xbf16>, vector<32x128xbf16>, vector<8x128xf32> -> vector<8x128xf32>
    %5 = vector.broadcast %2 : vector<1x128xf32> to vector<8x128xf32>
    %6 = arith.addf %4, %5 : vector<8x128xf32>
    %cst_5 = arith.constant 0.000000e+00 : f32
    %7 = vector.broadcast %cst_5 : f32 to vector<8x128xf32>
    %8 = arith.maximumf %6, %7 : vector<8x128xf32>
    %c0_6 = arith.constant 0 : index
    %c0_7 = arith.constant 0 : index
    %9 = vector.load %arg4[%c0_6, %c0_7] : memref<128x128xbf16, #tpu.memory_space<vmem>>, vector<128x128xbf16>
    %c0_8 = arith.constant 0 : index
    %c0_9 = arith.constant 0 : index
    %10 = vector.load %arg5[%c0_8, %c0_9] : memref<1x128xf32, #tpu.memory_space<vmem>>, vector<1x128xf32>
    %11 = arith.truncf %8 : vector<8x128xf32> to vector<8x128xbf16>
    %cst_10 = arith.constant dense<0.000000e+00> : vector<8x128xf32>
    %12 = tpu.matmul %11, %9, %cst_10 {dimension_numbers = #tpu.dot_dimension_numbers<[1], [0], [0], [1], [0, 0, 1, 1], [], []>} : vector<8x128xbf16>, vector<128x128xbf16>, vector<8x128xf32> -> vector<8x128xf32>
    %13 = vector.broadcast %10 : vector<1x128xf32> to vector<8x128xf32>
    %14 = arith.addf %12, %13 : vector<8x128xf32>
    %cst_11 = arith.constant 0.000000e+00 : f32
    %15 = vector.broadcast %cst_11 : f32 to vector<8x128xf32>
    %16 = arith.maximumf %14, %15 : vector<8x128xf32>
    %c0_12 = arith.constant 0 : index
    %c0_13 = arith.constant 0 : index
    %17 = vector.load %arg6[%c0_12, %c0_13] : memref<8x128xf32, #tpu.memory_space<vmem>>, vector<8x128xf32>
    tpu.vector_store %arg6[%c0_12, %c0_13], %16 {strides = array<i32>} : memref<8x128xf32, #tpu.memory_space<vmem>>, vector<8x128xf32>,
    return
  }
  func.func @transform_0(%arg0: i32) -> (i32, i32) {
    %c0_i32 = arith.constant 0 : i32
    %c0_i32_0 = arith.constant 0 : i32
    return %arg0, %c0_i32 : i32, i32
  }
  func.func @transform_1(%arg0: i32) -> (i32, i32) {
    %c0_i32 = arith.constant 0 : i32
    %c0_i32_0 = arith.constant 0 : i32
    %c0_i32_1 = arith.constant 0 : i32
    return %c0_i32, %c0_i32_0 : i32, i32
  }
  func.func @transform_2(%arg0: i32) -> (i32, i32) {
    %c0_i32 = arith.constant 0 : i32
    %c0_i32_0 = arith.constant 0 : i32
    %c0_i32_1 = arith.constant 0 : i32
    return %c0_i32, %c0_i32_0 : i32, i32
  }
  func.func @transform_3(%arg0: i32) -> (i32, i32) {
    %c0_i32 = arith.constant 0 : i32
    %c0_i32_0 = arith.constant 0 : i32
    %c0_i32_1 = arith.constant 0 : i32
    return %c0_i32, %c0_i32_0 : i32, i32
  }
  func.func @transform_4(%arg0: i32) -> (i32, i32) {
    %c0_i32 = arith.constant 0 : i32
    %c0_i32_0 = arith.constant 0 : i32
    %c0_i32_1 = arith.constant 0 : i32
    return %c0_i32, %c0_i32_0 : i32, i32
  }
  func.func @transform_5(%arg0: i32) -> (i32, i32) {
    %c0_i32 = arith.constant 0 : i32
    %c0_i32_0 = arith.constant 0 : i32
    return %arg0, %c0_i32 : i32, i32
  }
}

</mosaic_0001>

<bundles_post_ra>
// kernel: _forward.1
= control target key start
LH: loop header
LB: loop body
LE: loop exit
PB: predicated region body
PF: predicated region fallthrough
CT: control target
= control target key end

     0   :  { %10 = vsyncpa [#allocation3], 0  ;;  %s474_s0 = inlined_call_operand.hbm [shape: f32[8,32], index: 0, kind: input, shape index: {}]   ;;  %s475_s1 = inlined_call_operand.hbm [shape: bf16[32,128], index: 1, kind: input, shape index: {}]   ;;  %s476_s2 = inlined_call_operand.vmem [shape: f32[1,128], index: 2, kind: input, shape index: {}]   ;;  %s477_s3 = inlined_call_operand.hbm [shape: bf16[128,128], index: 3, kind: input, shape index: {}]   ;;  %s478_s4 = inlined_call_operand.vmem [shape: f32[1,128], index: 4, kind: input, shape index: {}]   ;;  %s479_s5 = inlined_call_operand.hbm [shape: f32[8,128], index: 5, kind: output, shape index: {}]  }
   0x1   :  { %11 = vsyncpa [#allocation6], 0 }
   0x2   :  { %12 = vsyncpa [#allocation4], 0  ;;  %s418_s18 = smov [#allocation5]  }
   0x3   :  { %s28_s19 = sshll.u32 %s418_s18, 4  ;;  %s29_s19 = int_to_ptr.vmem [resolvable:$true] %s28_s19 }
   0x4   :  { %s340_s20 = scalar_lea.vmem %s29_s19, 256  ;;  %p345_p1 = scmp.lt.s32.totalorder %s29_s19, %s29_s19 }
   0x5   :  { %p341_p0 = scmp.ne.s32.totalorder %s29_s19, %s340_s20  ;;  %p346_p2 = scmp.lt.s32.totalorder %s340_s20, %s340_s20 }
   0x7   :  { %p347_p3 = por %p346_p2, %p345_p1 }
   0x9   :  { %p348_p4 = pnand %p347_p3, %p341_p0 }
   0xb   :  { %351 = shalt.err (!%p348_p4)
}
   0xc   :  { %s419_s21 = smov 64   ;;  %s420_s22 = smov 4  }
   0xd   :  { %34 = dma.hbm_to_vmem [thread:$0]  %s475_s1, 256, %s29_s19, [#allocation6], %s419_s21, %s419_s21, %s420_s22  }
   0xe   :  { %s421_s25 = smov [#allocation2]   ;;  %s422_s27 = smov [#allocation7]  }
   0xf   :  { %s19_s26 = sshll.u32 %s421_s25, 4  ;;  %s42_s28 = sshll.u32 %s422_s27, 4  ;;  %s20_s26 = int_to_ptr.vmem [resolvable:$true] %s19_s26  ;;  %s43_s28 = int_to_ptr.vmem [resolvable:$true] %s42_s28 }
  0x10   :  { %s360_s29 = scalar_lea.vmem %s20_s26, 128  ;;  %p365_p6 = scmp.lt.s32.totalorder %s20_s26, %s20_s26 }
  0x11   :  { %p361_p5 = scmp.ne.s32.totalorder %s20_s26, %s360_s29  ;;  %p366_p7 = scmp.lt.s32.totalorder %s360_s29, %s360_s29 }
  0x13   :  { %p367_p8 = por %p366_p7, %p365_p6 }
  0x15   :  { %p368_p9 = pnand %p367_p8, %p361_p5 }
  0x17   :  { %371 = shalt.err (!%p368_p9)
}
  0x18   :  { %22 = dma.hbm_to_vmem [thread:$0]  %s474_s0, 128, %s20_s26, [#allocation3]  }
  0x19   :  { %s380_s7 = scalar_lea.vmem %s43_s28, 1024  ;;  %p385_p11 = scmp.lt.s32.totalorder %s43_s28, %s43_s28 }
  0x1a   :  { %p381_p10 = scmp.ne.s32.totalorder %s43_s28, %s380_s7  ;;  %p386_p12 = scmp.lt.s32.totalorder %s380_s7, %s380_s7 }
  0x1c   :  { %p387_p13 = por %p386_p12, %p385_p11 }
  0x1e   :  { %p388_p0 = pnand %p387_p13, %p381_p10 }
  0x20   :  { %391 = shalt.err (!%p388_p0)
}
  0x21   :  { %48 = dma.hbm_to_vmem [thread:$0]  %s477_s3, 1024, %s43_s28, [#allocation6], %s419_s21, %s419_s21, %s420_s22  }
  0x22   :  { %412 = dma.done.wait [#allocation3], 128  }
  0x23   :  { %413 = vsyncadd [#allocation3], 4294967168 }
  0x24   :  { %414 = dma.done.wait [#allocation6], 1280  }
  0x25   :  { %415 = vsyncadd [#allocation6], 4294966016  ;;  %v423_v0 = vmov 0.0   ;;  %vm424_vm0 = vmmov 0   ;;  %v322_v1 = vld [vmem:[#allocation5 + $0x8] sm:$0xff]   ;;  %v323_v2 = vld [vmem:[#allocation5] sm:$0xff]  }
  0x26   :  { %286 = vmatprep.subr.bf16.mxu0 %v423_v0  ;;  %290 = vmatprep.mubr.msk.bf16.mxu0 %vm424_vm0, %v423_v0  ;;  %v61_v3 = vld [vmem:[#allocation2] sm:$0xff]  ;;  %v324_v4 = vld [vmem:[#allocation7 + $0x38] sm:$0xff]   ;;  %v325_v6 = vld [vmem:[#allocation7 + $0x30] sm:$0xff]   ;;  %vm86_vm1 = vcmask 261120   ;;  %s425_s11 = smov [#allocation8]  }
  0x27   :  { %294 = vmatprep.subr.bf16.mxu1 %v423_v0  ;;  %310 = vmatprep.mubr.msk.bf16.mxu1 %vm424_vm0, %v423_v0  ;;  %v67_v5 = vpack.c.bf16 %v61_v3, %v61_v3  ;;  %v326_v7 = vld [vmem:[#allocation7 + $0x28] sm:$0xff]   ;;  %v327_v8 = vld [vmem:[#allocation7 + $0x20] sm:$0xff]   ;;  %v328_v9 = vld [vmem:[#allocation7 + $0x18] sm:$0xff]   ;;  %s251_s12 = sshll.u32 %s425_s11, 4  ;;  %s252_s12 = int_to_ptr.vmem [resolvable:$true] %s251_s12 }
  0x28   :  { %287 = vmatpush3.bf16.msra.mxu0 %v322_v1  ;;  %295 = vmatpush3.bf16.msra.mxu1 %v324_v4  ;;  %v329_v10 = vld [vmem:[#allocation7 + $0x10] sm:$0xff]   ;;  %v330_v11 = vld [vmem:[#allocation7 + $0x8] sm:$0xff]   ;;  %v331_v12 = vld [vmem:[#allocation7] sm:$0xff]   ;;  %p397_p2 = scmp.lt.s32.totalorder %s252_s12, %s252_s12 }
  0x29   :  { %288 = vmatprep.subr.bf16.mxu0 %v423_v0  ;;  %296 = vmatprep.subr.bf16.mxu1 %v423_v0  ;;  %v261_v13 = vld [vmem:[%s476_s2] ss:$0 sm:$0xff]  ;;  %s392_s2 = scalar_lea.vmem %s252_s12, 128 }
  0x2a   :  { %v265_v21 = vld [vmem:[%s478_s4] ss:$0 sm:$0xff]  ;;  %p393_p1 = scmp.ne.s32.totalorder %s252_s12, %s392_s2  ;;  %p398_p3 = scmp.lt.s32.totalorder %s392_s2, %s392_s2 }
  0x2c   :  { %289 = vmatpush3.bf16.msra.mxu0 %v323_v2  ;;  %297 = vmatpush3.bf16.msra.mxu1 %v325_v6  ;;  %p399_p4 = por %p398_p3, %p397_p2 }
  0x2d   :  { %298 = vmatprep.subr.bf16.mxu1 %v423_v0 }
  0x2e   :  { %p400_p5 = pnand %p399_p4, %p393_p1 }
  0x2f   :  { %291 = vmatmul.mubr.msk.bf16.vlgmr.msra.gmra.mxu0 %vm86_vm1, %v67_v5 }
  0x30   :  { %299 = vmatpush3.bf16.msra.mxu1 %v326_v7 }
  0x31   :  { %300 = vmatprep.subr.bf16.mxu1 %v423_v0 }
  0x34   :  { %301 = vmatpush3.bf16.msra.mxu1 %v327_v8 }
  0x35   :  { %302 = vmatprep.subr.bf16.mxu1 %v423_v0 }
  0x38   :  { %303 = vmatpush3.bf16.msra.mxu1 %v328_v9 }
  0x39   :  { %304 = vmatprep.subr.bf16.mxu1 %v423_v0 }
  0x3c   :  { %305 = vmatpush3.bf16.msra.mxu1 %v329_v10 }
  0x3d   :  { %306 = vmatprep.subr.bf16.mxu1 %v423_v0 }
  0x40   :  { %307 = vmatpush3.bf16.msra.mxu1 %v330_v11 }
  0x41   :  { %308 = vmatprep.subr.bf16.mxu1 %v423_v0 }
  0x44   :  { %309 = vmatpush3.bf16.msra.mxu1 %v331_v12 }
  0xef   :  { %v124_v14 = vpop.f32.mrf.mxu0 }
  0xf0   :  { %v125_v15 = vadd.f32 %v261_v13, %v124_v14 }
  0xf1   :  { %v292_v16 = vpop.f32.mrf.mxu0 }
  0xf2   :  { %v130_v17 = vmax.f32 %v125_v15, 0.0 }
  0xf3   :  { %v127_v18 = vpop.f32.mrf.mxu0 }
  0xf4   :  { %v148_v19 = vpack.c.bf16 %v130_v17, %v130_v17 }
  0xf5   :  { %v293_v20 = vpop.f32.mrf.mxu0 }
  0xf6   :  { %311 = vmatmul.mubr.bf16.vlgmr.msra.gmra.mxu1 %v148_v19 }
 0x1b6   :  { %v237_v22 = vpop.f32.mrf.mxu1 }
 0x1b7   :  { %v238_v23 = vadd.f32 %v265_v21, %v237_v22 }
 0x1b8   :  { %v312_v24 = vpop.f32.mrf.mxu1 }
 0x1b9   :  { %v243_v25 = vmax.f32 %v238_v23, 0.0 }
 0x1ba   :  { %v240_v26 = vpop.f32.mrf.mxu1 }
 0x1bb   :  { %244 = vst [vmem:[#allocation8] sm:$0xff] %v243_v25 }
 0x1bc   :  { %v313_v27 = vpop.f32.mrf.mxu1 }
 0x1bd   :  { %403 = shalt.err (!%p400_p5)
}
 0x1be   :  { %254 = dma.vmem_to_hbm [thread:$0]  %s252_s12, 128, %s479_s5, [#allocation4]  }
 0x1bf   :  { %416 = dma.done.wait [#allocation4], 128  }
 0x1c0   :  { %417 = vsyncadd [#allocation4], 4294967168 }
 0x1c1   :  { %258 = vsyncpa [#allocation3], 1 }
 0x1c2   :  { %259 = vsyncpa [#allocation6], 1 }
 0x1c3   :  { %260 = vsyncpa [#allocation4], 1 }

// kernel: _forward.1
= control target key start
LH: loop header
LB: loop body
LE: loop exit
PB: predicated region body
PF: predicated region fallthrough
CT: control target
= control target key end

     0   :  { %10 = vsyncpa [#allocation3], 0  ;;  %s474_s0 = inlined_call_operand.hbm [shape: f32[8,32], index: 0, kind: input, shape index: {}]   ;;  %s475_s1 = inlined_call_operand.hbm [shape: bf16[32,128], index: 1, kind: input, shape index: {}]   ;;  %s476_s2 = inlined_call_operand.vmem [shape: f32[1,128], index: 2, kind: input, shape index: {}]   ;;  %s477_s3 = inlined_call_operand.hbm [shape: bf16[128,128], index: 3, kind: input, shape index: {}]   ;;  %s478_s4 = inlined_call_operand.vmem [shape: f32[1,128], index: 4, kind: input, shape index: {}]   ;;  %s479_s5 = inlined_call_operand.hbm [shape: f32[8,128], index: 5, kind: output, shape index: {}]  }
   0x1   :  { %11 = vsyncpa [#allocation6], 0 }
   0x2   :  { %12 = vsyncpa [#allocation4], 0  ;;  %s418_s18 = smov [#allocation5]  }
   0x3   :  { %s28_s19 = sshll.u32 %s418_s18, 4  ;;  %s29_s19 = int_to_ptr.vmem [resolvable:$true] %s28_s19 }
   0x4   :  { %s340_s20 = scalar_lea.vmem %s29_s19, 256  ;;  %p345_p1 = scmp.lt.s32.totalorder %s29_s19, %s29_s19 }
   0x5   :  { %p341_p0 = scmp.ne.s32.totalorder %s29_s19, %s340_s20  ;;  %p346_p2 = scmp.lt.s32.totalorder %s340_s20, %s340_s20 }
   0x7   :  { %p347_p3 = por %p346_p2, %p345_p1 }
   0x9   :  { %p348_p4 = pnand %p347_p3, %p341_p0 }
   0xb   :  { %351 = shalt.err (!%p348_p4)
}
   0xc   :  { %s419_s21 = smov 64   ;;  %s420_s22 = smov 4  }
   0xd   :  { %34 = dma.hbm_to_vmem [thread:$0]  %s475_s1, 256, %s29_s19, [#allocation6], %s419_s21, %s419_s21, %s420_s22  }
   0xe   :  { %s421_s25 = smov [#allocation2]   ;;  %s422_s27 = smov [#allocation7]  }
   0xf   :  { %s19_s26 = sshll.u32 %s421_s25, 4  ;;  %s42_s28 = sshll.u32 %s422_s27, 4  ;;  %s20_s26 = int_to_ptr.vmem [resolvable:$true] %s19_s26  ;;  %s43_s28 = int_to_ptr.vmem [resolvable:$true] %s42_s28 }
  0x10   :  { %s360_s29 = scalar_lea.vmem %s20_s26, 128  ;;  %p365_p6 = scmp.lt.s32.totalorder %s20_s26, %s20_s26 }
  0x11   :  { %p361_p5 = scmp.ne.s32.totalorder %s20_s26, %s360_s29  ;;  %p366_p7 = scmp.lt.s32.totalorder %s360_s29, %s360_s29 }
  0x13   :  { %p367_p8 = por %p366_p7, %p365_p6 }
  0x15   :  { %p368_p9 = pnand %p367_p8, %p361_p5 }
  0x17   :  { %371 = shalt.err (!%p368_p9)
}
  0x18   :  { %22 = dma.hbm_to_vmem [thread:$0]  %s474_s0, 128, %s20_s26, [#allocation3]  }
  0x19   :  { %s380_s7 = scalar_lea.vmem %s43_s28, 1024  ;;  %p385_p11 = scmp.lt.s32.totalorder %s43_s28, %s43_s28 }
  0x1a   :  { %p381_p10 = scmp.ne.s32.totalorder %s43_s28, %s380_s7  ;;  %p386_p12 = scmp.lt.s32.totalorder %s380_s7, %s380_s7 }
  0x1c   :  { %p387_p13 = por %p386_p12, %p385_p11 }
  0x1e   :  { %p388_p0 = pnand %p387_p13, %p381_p10 }
  0x20   :  { %391 = shalt.err (!%p388_p0)
}
  0x21   :  { %48 = dma.hbm_to_vmem [thread:$0]  %s477_s3, 1024, %s43_s28, [#allocation6], %s419_s21, %s419_s21, %s420_s22  }
  0x22   :  { %412 = dma.done.wait [#allocation3], 128  }
  0x23   :  { %413 = vsyncadd [#allocation3], 4294967168 }
  0x24   :  { %414 = dma.done.wait [#allocation6], 1280  }
  0x25   :  { %415 = vsyncadd [#allocation6], 4294966016  ;;  %v423_v0 = vmov 0.0   ;;  %vm424_vm0 = vmmov 0   ;;  %v322_v1 = vld [vmem:[#allocation5 + $0x8] sm:$0xff]   ;;  %v323_v2 = vld [vmem:[#allocation5] sm:$0xff]  }
  0x26   :  { %286 = vmatprep.subr.bf16.mxu0 %v423_v0  ;;  %290 = vmatprep.mubr.msk.bf16.mxu0 %vm424_vm0, %v423_v0  ;;  %v61_v3 = vld [vmem:[#allocation2] sm:$0xff]  ;;  %v324_v4 = vld [vmem:[#allocation7 + $0x38] sm:$0xff]   ;;  %v325_v6 = vld [vmem:[#allocation7 + $0x30] sm:$0xff]   ;;  %vm86_vm1 = vcmask 261120   ;;  %s425_s11 = smov [#allocation8]  }
  0x27   :  { %294 = vmatprep.subr.bf16.mxu1 %v423_v0  ;;  %310 = vmatprep.mubr.msk.bf16.mxu1 %vm424_vm0, %v423_v0  ;;  %v67_v5 = vpack.c.bf16 %v61_v3, %v61_v3  ;;  %v326_v7 = vld [vmem:[#allocation7 + $0x28] sm:$0xff]   ;;  %v327_v8 = vld [vmem:[#allocation7 + $0x20] sm:$0xff]   ;;  %v328_v9 = vld [vmem:[#allocation7 + $0x18] sm:$0xff]   ;;  %s251_s12 = sshll.u32 %s425_s11, 4  ;;  %s252_s12 = int_to_ptr.vmem [resolvable:$true] %s251_s12 }
  0x28   :  { %287 = vmatpush3.bf16.msra.mxu0 %v322_v1  ;;  %295 = vmatpush3.bf16.msra.mxu1 %v324_v4  ;;  %v329_v10 = vld [vmem:[#allocation7 + $0x10] sm:$0xff]   ;;  %v330_v11 = vld [vmem:[#allocation7 + $0x8] sm:$0xff]   ;;  %v331_v12 = vld [vmem:[#allocation7] sm:$0xff]   ;;  %p397_p2 = scmp.lt.s32.totalorder %s252_s12, %s252_s12 }
  0x29   :  { %288 = vmatprep.subr.bf16.mxu0 %v423_v0  ;;  %296 = vmatprep.subr.bf16.mxu1 %v423_v0  ;;  %v261_v13 = vld [vmem:[%s476_s2] ss:$0 sm:$0xff]  ;;  %s392_s2 = scalar_lea.vmem %s252_s12, 128 }
  0x2a   :  { %v265_v21 = vld [vmem:[%s478_s4] ss:$0 sm:$0xff]  ;;  %p393_p1 = scmp.ne.s32.totalorder %s252_s12, %s392_s2  ;;  %p398_p3 = scmp.lt.s32.totalorder %s392_s2, %s392_s2 }
  0x2c   :  { %289 = vmatpush3.bf16.msra.mxu0 %v323_v2  ;;  %297 = vmatpush3.bf16.msra.mxu1 %v325_v6  ;;  %p399_p4 = por %p398_p3, %p397_p2 }
  0x2d   :  { %298 = vmatprep.subr.bf16.mxu1 %v423_v0 }
  0x2e   :  { %p400_p5 = pnand %p399_p4, %p393_p1 }
  0x2f   :  { %291 = vmatmul.mubr.msk.bf16.vlgmr.msra.gmra.mxu0 %vm86_vm1, %v67_v5 }
  0x30   :  { %299 = vmatpush3.bf16.msra.mxu1 %v326_v7 }
  0x31   :  { %300 = vmatprep.subr.bf16.mxu1 %v423_v0 }
  0x34   :  { %301 = vmatpush3.bf16.msra.mxu1 %v327_v8 }
  0x35   :  { %302 = vmatprep.subr.bf16.mxu1 %v423_v0 }
  0x38   :  { %303 = vmatpush3.bf16.msra.mxu1 %v328_v9 }
  0x39   :  { %304 = vmatprep.subr.bf16.mxu1 %v423_v0 }
  0x3c   :  { %305 = vmatpush3.bf16.msra.mxu1 %v329_v10 }
  0x3d   :  { %306 = vmatprep.subr.bf16.mxu1 %v423_v0 }
  0x40   :  { %307 = vmatpush3.bf16.msra.mxu1 %v330_v11 }
  0x41   :  { %308 = vmatprep.subr.bf16.mxu1 %v423_v0 }
  0x44   :  { %309 = vmatpush3.bf16.msra.mxu1 %v331_v12 }
  0xef   :  { %v124_v14 = vpop.f32.mrf.mxu0 }
  0xf0   :  { %v125_v15 = vadd.f32 %v261_v13, %v124_v14 }
  0xf1   :  { %v292_v16 = vpop.f32.mrf.mxu0 }
  0xf2   :  { %v130_v17 = vmax.f32 %v125_v15, 0.0 }
  0xf3   :  { %v127_v18 = vpop.f32.mrf.mxu0 }
  0xf4   :  { %v148_v19 = vpack.c.bf16 %v130_v17, %v130_v17 }
  0xf5   :  { %v293_v20 = vpop.f32.mrf.mxu0 }
  0xf6   :  { %311 = vmatmul.mubr.bf16.vlgmr.msra.gmra.mxu1 %v148_v19 }
 0x1b6   :  { %v237_v22 = vpop.f32.mrf.mxu1 }
 0x1b7   :  { %v238_v23 = vadd.f32 %v265_v21, %v237_v22 }
 0x1b8   :  { %v312_v24 = vpop.f32.mrf.mxu1 }
 0x1b9   :  { %v243_v25 = vmax.f32 %v238_v23, 0.0 }
 0x1ba   :  { %v240_v26 = vpop.f32.mrf.mxu1 }
 0x1bb   :  { %244 = vst [vmem:[#allocation8] sm:$0xff] %v243_v25 }
 0x1bc   :  { %v313_v27 = vpop.f32.mrf.mxu1 }
 0x1bd   :  { %403 = shalt.err (!%p400_p5)
}
 0x1be   :  { %254 = dma.vmem_to_hbm [thread:$0]  %s252_s12, 128, %s479_s5, [#allocation4]  }
 0x1bf   :  { %416 = dma.done.wait [#allocation4], 128  }
 0x1c0   :  { %417 = vsyncadd [#allocation4], 4294967168 }
 0x1c1   :  { %258 = vsyncpa [#allocation3], 1 }
 0x1c2   :  { %259 = vsyncpa [#allocation6], 1 }
 0x1c3   :  { %260 = vsyncpa [#allocation4], 1 }

</bundles_post_ra>
